<compile_context>
chip_gen: v7x
topology: tpu7x:2x2x1
jax: 0.10.0
libtpu: 0.0.40
codegen_flags: <defaults>
</compile_context>

<pallas_src>
import jax
import jax.numpy as jnp
from jax.experimental import pallas as pl
from jax.experimental.pallas import tpu as pltpu


def _q_sample_kernel(x_ref, z_ref, mask_ref, coef_ref, expand_ref,
                     xt_ref, tgt_ref):
    """Row-tiled q_sample on flattened (rows, N*D) tokens.

    x_t    = sqrt(alpha_bar_t) * x0 + sqrt(1 - alpha_bar_t) * eps  (valid tokens)
           = x0                                                     (masked-out tokens)
    target = eps on valid tokens, 0 elsewhere.
    """
    x = x_ref[...]                       # (bb, L) f32
    z = z_ref[...]                       # (bb, L) f32
    c0 = coef_ref[:, 0:1]                # (bb, 1) sqrt(alpha_bar_t)   -> lane-broadcast
    c1 = coef_ref[:, 1:2]                # (bb, 1) sqrt(1-alpha_bar_t) -> lane-broadcast

    # Expand per-token mask (bb, N) to per-element (bb, N*D) with one tiny MXU
    # matmul against a constant 0/1 expansion matrix (result is exactly 0/1).
    m = jnp.dot(mask_ref[...], expand_ref[...],
                preferred_element_type=jnp.float32)       # (bb, L)
    valid = m > 0.0

    xt_ref[...] = jnp.where(valid, c0 * x + c1 * z, x)
    tgt_ref[...] = jnp.where(valid, z, 0.0)


def _choose_row_tile(n_rows: int, n_lanes: int,
                     target_block_bytes: int = 2 * 1024 * 1024):
    """Largest row tile giving ~target_block_bytes per f32 (rows, n_lanes) block."""
    rows = max(1, target_block_bytes // (n_lanes * 4))
    if rows >= n_rows:
        return n_rows, 0                      # whole array in one grid step
    rows = max(8, (rows // 8) * 8)            # keep sublane (8) alignment
    pad = (-n_rows) % rows
    return rows, pad


def diffusion_q_sample(x, z, mask, t, sqrt_alpha_bar, sqrt_one_minus_alpha_bar):
    """Pallas forward-noising step shared by all Diffusion subclasses.

    x, z:   (B, N, D) float32 tokens / noise
    mask:   (B, N)    bool / float, True = valid token
    t:      (B,)      int32 timesteps
    sqrt_alpha_bar, sqrt_one_minus_alpha_bar: (T,) float32 schedule tables
    returns (x_t, target), both (B, N, D) float32
    """
    B, N, D = x.shape
    L = N * D
    T = sqrt_alpha_bar.shape[0]

    # Gather per-batch schedule coefficients in the wrapper (bounds-safe).
    t = jnp.clip(t.astype(jnp.int32), 0, T - 1)
    coefs = jnp.stack([sqrt_alpha_bar[t], sqrt_one_minus_alpha_bar[t]],
                      axis=-1).astype(jnp.float32)         # (B, 2)

    # Lane-dense flattened views: one row per batch element, N*D lanes.
    x2 = x.reshape(B, L).astype(jnp.float32)
    z2 = z.reshape(B, L).astype(jnp.float32)
    mask_f = mask.astype(jnp.float32)                      # (B, N)

    # Constant 0/1 expansion matrix: expand[n, n*D + d] = 1.
    expand = (jnp.arange(L, dtype=jnp.int32)[None, :] // D
              == jnp.arange(N, dtype=jnp.int32)[:, None]).astype(jnp.float32)

    block_rows, pad = _choose_row_tile(B, L)
    if pad:
        x2 = jnp.pad(x2, ((0, pad), (0, 0)))
        z2 = jnp.pad(z2, ((0, pad), (0, 0)))
        mask_f = jnp.pad(mask_f, ((0, pad), (0, 0)))
        coefs = jnp.pad(coefs, ((0, pad), (0, 0)))
    rows_total = B + pad
    grid = (rows_total // block_rows,)

    row_spec = pl.BlockSpec((block_rows, L), lambda i: (i, 0))
    msk_spec = pl.BlockSpec((block_rows, N), lambda i: (i, 0))
    cof_spec = pl.BlockSpec((block_rows, 2), lambda i: (i, 0))
    exp_spec = pl.BlockSpec((N, L), lambda i: (0, 0))      # resident constant

    x_t, target = pl.pallas_call(
        _q_sample_kernel,
        grid=grid,
        in_specs=[row_spec, row_spec, msk_spec, cof_spec, exp_spec],
        out_specs=[row_spec, row_spec],
        out_shape=(
            jax.ShapeDtypeStruct((rows_total, L), jnp.float32),
            jax.ShapeDtypeStruct((rows_total, L), jnp.float32),
        ),
        compiler_params=pltpu.CompilerParams(
            dimension_semantics=("parallel",),
            vmem_limit_bytes=48 * 1024 * 1024,
        ),
    )(x2, z2, mask_f, coefs, expand)

    x_t = x_t[:B].reshape(B, N, D)
    target = target[:B].reshape(B, N, D)
    return x_t, target


def _reference(x, z, mask, t, sab, s1mab):
    c0 = sab[t][:, None, None]
    c1 = s1mab[t][:, None, None]
    m = mask.astype(jnp.float32)[:, :, None]
    x_t = jnp.where(m > 0, c0 * x + c1 * z, x)
    tgt = jnp.where(m > 0, z, jnp.zeros_like(z))
    return x_t, tgt


if __name__ == "__main__":
    # Small shapes consistent with the module's token-based forward:
    # batch=2, n_tokens=8, token_dim=32, T=1000 diffusion steps.
    B, N, D, T = 2, 8, 32, 1000

    key = jax.random.PRNGKey(0)
    k_x, k_z, k_m, k_t = jax.random.split(key, 4)

    x = jax.random.normal(k_x, (B, N, D), dtype=jnp.float32)          # tokens.x
    z = jax.random.normal(k_z, (B, N, D), dtype=jnp.float32)          # noise
    mask = jax.random.uniform(k_m, (B, N)) > 0.3                      # token mask
    t = jax.random.randint(k_t, (B,), 0, T, dtype=jnp.int32)          # timesteps

    # Deterministic linear-beta DDPM schedule (in-script, no checkpoint load).
    betas = jnp.linspace(1e-4, 2e-2, T, dtype=jnp.float32)
    alphas_cumprod = jnp.cumprod(1.0 - betas)
    sqrt_ab = jnp.sqrt(alphas_cumprod)
    sqrt_1mab = jnp.sqrt(1.0 - alphas_cumprod)

    x_t, target = diffusion_q_sample(x, z, mask, t, sqrt_ab, sqrt_1mab)
    jax.block_until_ready((x_t, target))

    x_t_ref, target_ref = _reference(x, z, mask, t, sqrt_ab, sqrt_1mab)
    assert jnp.allclose(x_t, x_t_ref, atol=1e-5, rtol=1e-5)
    assert jnp.allclose(target, target_ref, atol=1e-5, rtol=1e-5)

    print("KERNEL_OK")
</pallas_src>

<mosaic_0001>
module attributes {stable_mosaic.version = 11 : i64} {
  func.func @_q_sample_kernel(%arg0: i32, %arg1: memref<2x256xf32, #tpu.memory_space<vmem>>, %arg2: memref<2x256xf32, #tpu.memory_space<vmem>>, %arg3: memref<2x8xf32, #tpu.memory_space<vmem>>, %arg4: memref<2x2xf32, #tpu.memory_space<vmem>>, %arg5: memref<8x256xf32, #tpu.memory_space<vmem>>, %arg6: memref<2x256xf32, #tpu.memory_space<vmem>>, %arg7: memref<2x256xf32, #tpu.memory_space<vmem>>) attributes {dimension_semantics = [#tpu.dimension_semantics<parallel>], iteration_bounds = array<i64: 1>, scalar_prefetch = 0 : i64, scratch_operands = 0 : i64, tpu.core_type = #tpu.core_type<tc>, window_params = [{transform_indices = @transform_0, window_bounds = array<i64: 2, 256>}, {transform_indices = @transform_1, window_bounds = array<i64: 2, 256>}, {transform_indices = @transform_2, window_bounds = array<i64: 2, 8>}, {transform_indices = @transform_3, window_bounds = array<i64: 2, 2>}, {pipeline_mode = #tpu.pipeline_mode<synchronous>, transform_indices = @transform_4, window_bounds = array<i64: 8, 256>}, {transform_indices = @transform_5, window_bounds = array<i64: 2, 256>}, {transform_indices = @transform_6, window_bounds = array<i64: 2, 256>}]} {
    %c0 = arith.constant 0 : index
    %c0_0 = arith.constant 0 : index
    %0 = vector.load %arg1[%c0, %c0_0] : memref<2x256xf32, #tpu.memory_space<vmem>>, vector<2x256xf32>
    %c0_1 = arith.constant 0 : index
    %c0_2 = arith.constant 0 : index
    %1 = vector.load %arg2[%c0_1, %c0_2] : memref<2x256xf32, #tpu.memory_space<vmem>>, vector<2x256xf32>
    %c0_3 = arith.constant 0 : index
    %c0_4 = arith.constant 0 : index
    %2 = vector.load %arg4[%c0_3, %c0_4] : memref<2x2xf32, #tpu.memory_space<vmem>>, vector<2x1xf32>
    %c0_5 = arith.constant 0 : index
    %c1 = arith.constant 1 : index
    %3 = vector.load %arg4[%c0_5, %c1] : memref<2x2xf32, #tpu.memory_space<vmem>>, vector<2x1xf32>
    %c0_6 = arith.constant 0 : index
    %c0_7 = arith.constant 0 : index
    %4 = vector.load %arg3[%c0_6, %c0_7] : memref<2x8xf32, #tpu.memory_space<vmem>>, vector<2x8xf32>
    %c0_8 = arith.constant 0 : index
    %c0_9 = arith.constant 0 : index
    %5 = vector.load %arg5[%c0_8, %c0_9] : memref<8x256xf32, #tpu.memory_space<vmem>>, vector<8x256xf32>
    %cst = arith.constant dense<0.000000e+00> : vector<2x256xf32>
    %6 = tpu.matmul %4, %5, %cst {dimension_numbers = #tpu.dot_dimension_numbers<[1], [0], [0], [1], [0, 0, 1, 1], [], []>} : vector<2x8xf32>, vector<8x256xf32>, vector<2x256xf32> -> vector<2x256xf32>
    %cst_10 = arith.constant 0.000000e+00 : f32
    %7 = vector.broadcast %cst_10 : f32 to vector<2x256xf32>
    %8 = arith.cmpf ogt, %6, %7 : vector<2x256xf32>
    %9 = vector.broadcast %2 : vector<2x1xf32> to vector<2x256xf32>
    %10 = arith.mulf %9, %0 : vector<2x256xf32>
    %11 = vector.broadcast %3 : vector<2x1xf32> to vector<2x256xf32>
    %12 = arith.mulf %11, %1 : vector<2x256xf32>
    %13 = arith.addf %10, %12 : vector<2x256xf32>
    %14 = arith.select %8, %13, %0 : vector<2x256xi1>, vector<2x256xf32>
    %c0_11 = arith.constant 0 : index
    %c0_12 = arith.constant 0 : index
    %15 = vector.load %arg6[%c0_11, %c0_12] : memref<2x256xf32, #tpu.memory_space<vmem>>, vector<2x256xf32>
    tpu.vector_store %arg6[%c0_11, %c0_12], %14 {strides = array<i32>} : memref<2x256xf32, #tpu.memory_space<vmem>>, vector<2x256xf32>,
    %cst_13 = arith.constant 0.000000e+00 : f32
    %16 = vector.broadcast %cst_13 : f32 to vector<2x256xf32>
    %17 = arith.select %8, %1, %16 : vector<2x256xi1>, vector<2x256xf32>
    %c0_14 = arith.constant 0 : index
    %c0_15 = arith.constant 0 : index
    %18 = vector.load %arg7[%c0_14, %c0_15] : memref<2x256xf32, #tpu.memory_space<vmem>>, vector<2x256xf32>
    tpu.vector_store %arg7[%c0_14, %c0_15], %17 {strides = array<i32>} : memref<2x256xf32, #tpu.memory_space<vmem>>, vector<2x256xf32>,
    return
  }
  func.func @transform_0(%arg0: i32) -> (i32, i32) {
    %c0_i32 = arith.constant 0 : i32
    %c0_i32_0 = arith.constant 0 : i32
    return %arg0, %c0_i32 : i32, i32
  }
  func.func @transform_1(%arg0: i32) -> (i32, i32) {
    %c0_i32 = arith.constant 0 : i32
    %c0_i32_0 = arith.constant 0 : i32
    return %arg0, %c0_i32 : i32, i32
  }
  func.func @transform_2(%arg0: i32) -> (i32, i32) {
    %c0_i32 = arith.constant 0 : i32
    %c0_i32_0 = arith.constant 0 : i32
    return %arg0, %c0_i32 : i32, i32
  }
  func.func @transform_3(%arg0: i32) -> (i32, i32) {
    %c0_i32 = arith.constant 0 : i32
    %c0_i32_0 = arith.constant 0 : i32
    return %arg0, %c0_i32 : i32, i32
  }
  func.func @transform_4(%arg0: i32) -> (i32, i32) {
    %c0_i32 = arith.constant 0 : i32
    %c0_i32_0 = arith.constant 0 : i32
    %c0_i32_1 = arith.constant 0 : i32
    return %c0_i32, %c0_i32_0 : i32, i32
  }
  func.func @transform_5(%arg0: i32) -> (i32, i32) {
    %c0_i32 = arith.constant 0 : i32
    %c0_i32_0 = arith.constant 0 : i32
    return %arg0, %c0_i32 : i32, i32
  }
  func.func @transform_6(%arg0: i32) -> (i32, i32) {
    %c0_i32 = arith.constant 0 : i32
    %c0_i32_0 = arith.constant 0 : i32
    return %arg0, %c0_i32 : i32, i32
  }
}

</mosaic_0001>

<bundles_post_ra>
// kernel: tpu_custom_call.1
= control target key start
LH: loop header
LB: loop body
LE: loop exit
PB: predicated region body
PF: predicated region fallthrough
CT: control target
= control target key end

     0   :  { %12 = vsyncpa [#allocation3], 0  ;;  %s479_s0 = inlined_call_operand.hbm [shape: f32[2,256], index: 0, kind: input, shape index: {}]   ;;  %s480_s1 = inlined_call_operand.hbm [shape: f32[2,256], index: 1, kind: input, shape index: {}]   ;;  %s481_s2 = inlined_call_operand.vmem [shape: f32[2,8], index: 2, kind: input, shape index: {}]   ;;  %s482_s3 = inlined_call_operand.vmem [shape: f32[2,2], index: 3, kind: input, shape index: {}]   ;;  %s483_s4 = inlined_call_operand.hbm [shape: f32[8,256], index: 4, kind: input, shape index: {}]   ;;  %s484_s5 = inlined_call_operand.hbm [shape: f32[2,256], index: 5, kind: output, shape index: {0}]   ;;  %s485_s6 = inlined_call_operand.hbm [shape: f32[2,256], index: 6, kind: output, shape index: {1}]  }
   0x1   :  { %13 = vsyncpa [#allocation6], 0 }
   0x2   :  { %14 = vsyncpa [#allocation4], 0 }
   0x3   :  { %15 = vsyncpa [#allocation10], 0  ;;  %s370_s21 = smov [#allocation5]   ;;  %s371_s23 = smov [#allocation2]  }
   0x4   :  { %s32_s22 = sshll.u32 %s370_s21, 4  ;;  %s22_s24 = sshll.u32 %s371_s23, 4  ;;  %s33_s22 = int_to_ptr.vmem [resolvable:$true] %s32_s22  ;;  %s23_s24 = int_to_ptr.vmem [resolvable:$true] %s22_s24 }
   0x5   :  { %s252_s27 = scalar_lea.hbm %s480_s1, 64 }
   0x6   :  { %p253_p0 = scmp.ne.s32.totalorder %s480_s1, %s252_s27  ;;  %p256_p1 = scmp.lt.u32.totalorder %s252_s27, %s480_s1 }
   0x8   :  { %p258_p2 = pnand %p256_p1, %p253_p0 }
   0xa   :  { %261 = shalt.err (!%p258_p2)
}
   0xb   :  { %s262_s8 = scalar_lea.vmem %s33_s22, 64  ;;  %p267_p4 = scmp.lt.s32.totalorder %s33_s22, %s33_s22 }
   0xc   :  { %p263_p3 = scmp.ne.s32.totalorder %s33_s22, %s262_s8  ;;  %p268_p5 = scmp.lt.s32.totalorder %s262_s8, %s262_s8 }
   0xe   :  { %p269_p6 = por %p268_p5, %p267_p4 }
  0x10   :  { %p270_p7 = pnand %p269_p6, %p263_p3 }
  0x12   :  { %273 = shalt.err (!%p270_p7)
}
  0x13   :  { %35 = dma.hbm_to_vmem [thread:$0]  %s480_s1, 64, %s33_s22, [#allocation6]  }
  0x14   :  { %s274_s13 = scalar_lea.hbm %s479_s0, 64 }
  0x15   :  { %p275_p8 = scmp.ne.s32.totalorder %s479_s0, %s274_s13  ;;  %p278_p9 = scmp.lt.u32.totalorder %s274_s13, %s479_s0 }
  0x17   :  { %p280_p10 = pnand %p278_p9, %p275_p8 }
  0x19   :  { %283 = shalt.err (!%p280_p10)
}
  0x1a   :  { %s284_s18 = scalar_lea.vmem %s23_s24, 64  ;;  %p289_p12 = scmp.lt.s32.totalorder %s23_s24, %s23_s24 }
  0x1b   :  { %p285_p11 = scmp.ne.s32.totalorder %s23_s24, %s284_s18  ;;  %p290_p13 = scmp.lt.s32.totalorder %s284_s18, %s284_s18 }
  0x1d   :  { %p291_p0 = por %p290_p13, %p289_p12 }
  0x1f   :  { %p292_p1 = pnand %p291_p0, %p285_p11 }
  0x21   :  { %295 = shalt.err (!%p292_p1)
}
  0x22   :  { %25 = dma.hbm_to_vmem [thread:$0]  %s479_s0, 64, %s23_s24, [#allocation3]  }
  0x23   :  { %s372_s20 = smov [#allocation7]   ;;  %s296_s25 = scalar_lea.hbm %s483_s4, 256 }
  0x24   :  { %s46_s21 = sshll.u32 %s372_s20, 4  ;;  %p297_p2 = scmp.ne.s32.totalorder %s483_s4, %s296_s25  ;;  %s47_s21 = int_to_ptr.vmem [resolvable:$true] %s46_s21 }
  0x25   :  { %p300_p3 = scmp.lt.u32.totalorder %s296_s25, %s483_s4 }
  0x27   :  { %p302_p4 = pnand %p300_p3, %p297_p2 }
  0x29   :  { %305 = shalt.err (!%p302_p4)
}
  0x2a   :  { %s306_s30 = scalar_lea.vmem %s47_s21, 256  ;;  %p311_p6 = scmp.lt.s32.totalorder %s47_s21, %s47_s21 }
  0x2b   :  { %p307_p5 = scmp.ne.s32.totalorder %s47_s21, %s306_s30  ;;  %p312_p7 = scmp.lt.s32.totalorder %s306_s30, %s306_s30 }
  0x2d   :  { %p313_p8 = por %p312_p7, %p311_p6 }
  0x2f   :  { %p314_p9 = pnand %p313_p8, %p307_p5 }
  0x31   :  { %317 = shalt.err (!%p314_p9)
}
  0x32   :  { %49 = dma.hbm_to_vmem [thread:$0]  %s483_s4, 256, %s47_s21, [#allocation6]  }
  0x33   :  { %362 = dma.done.wait [#allocation3], 64  }
  0x34   :  { %363 = vsyncadd [#allocation3], 4294967232 }
  0x35   :  { %364 = dma.done.wait [#allocation6], 320  }
  0x36   :  { %365 = vsyncadd [#allocation6], 4294966976  ;;  %v373_v0 = vmov 0.0   ;;  %v374_v1 = vmov 0   ;;  %v64_v2 = vld [vmem:[#allocation7 + $0x8] sm:$0xff]  ;;  %v63_v3 = vld [vmem:[#allocation7] sm:$0xff] }
  0x37   :  { %133 = vmatprep.mubr.f32.mxu0 %v373_v0  ;;  %250 = vset.pattern.permute.xlu0 %v374_v1  ;;  %v62_v4 = vld [vmem:[%s481_s2] sm:$0x3]  ;;  %vm65_vm0 = vcmask 64512   ;;  %v375_v6 = vmov 1   ;;  %s376_s2 = smov [#allocation8]   ;;  %s377_s4 = smov [#allocation9]  }
  0x38   :  { %69 = vmatprep.subr.mxu0 %v64_v2  ;;  %v61_v5 = vld [vmem:[%s482_s3] sm:$0x3]  ;;  %v239_v9 = vld.sshfl [vmem:[#allocation5] sm:$0x33 pattern:$0x76325410] }
  0x39   :  { %70 = vmatpush1.msra.mxu0 %v63_v3  ;;  %144 = vperm.xlu0 %250, %v61_v5   ;;  %v238_v8 = vld.sshfl [vmem:[#allocation2] sm:$0x33 pattern:$0x76325410]  ;;  %v172_v12 = vcombine.high %v239_v9, %v239_v9  ;;  %s213_s3 = sshll.u32 %s376_s2, 4  ;;  %s223_s11 = sshll.u32 %s377_s4, 4  ;;  %s214_s3 = int_to_ptr.vmem [resolvable:$true] %s213_s3  ;;  %s224_s11 = int_to_ptr.vmem [resolvable:$true] %s223_s11 }
  0x3a   :  { %237 = vmatmul.mubr.msk.f32.vlgmr.msra.gmra.mrb[0].mxu0 %vm65_vm0, %v62_v4  ;;  %v155_v10 = vcombine.high %v238_v8, %v238_v8  ;;  %s318_s12 = scalar_lea.vmem %s214_s3, 64  ;;  %p323_p11 = scmp.lt.s32.totalorder %s214_s3, %s214_s3 }
  0x3b   :  { %p319_p10 = scmp.ne.s32.totalorder %s214_s3, %s318_s12  ;;  %p324_p12 = scmp.lt.s32.totalorder %s318_s12, %s318_s12 }
  0x3d   :  { %251 = vset.pattern.permute.xlu0 %v375_v6  ;;  %p325_p13 = por %p324_p12, %p323_p11 }
  0x3e   :  { %161 = vperm.xlu0 %251, %v61_v5  }
  0x3f   :  { %p326_p0 = pnand %p325_p13, %p319_p10 }
  0xb8   :  { %v145_v7 = vpop.permute.xlu0 %144 }
  0xb9   :  { %v158_v13 = vmul.f32 %v238_v8, %v145_v7  ;;  %v159_v15 = vmul.f32 %v155_v10, %v145_v7 }
  0xbd   :  { %v162_v11 = vpop.permute.xlu0 %161 }
  0xbe   :  { %v175_v14 = vmul.f32 %v239_v9, %v162_v11  ;;  %v176_v16 = vmul.f32 %v172_v12, %v162_v11 }
  0xc0   :  { %v177_v17 = vadd.f32 %v175_v14, %v158_v13  ;;  %v178_v19 = vadd.f32 %v176_v16, %v159_v15 }
 0x10d   :  { %v135_v18 = vpop.f32.mrb[0].mxu0 }
 0x10e   :  { %vm140_vm1 = vcmp.gt.f32.partialorder %v135_v18, 0.0  ;;  %v137_v20 = vpop.f32.mrb[1].mxu0 }
 0x10f   :  { %v179_v21 = vsel %vm140_vm1, %v177_v17, %v238_v8  ;;  %v193_v22 = vsel %vm140_vm1, %v239_v9, 0.0  ;;  %vm141_vm2 = vcmp.gt.f32.partialorder %v137_v20, 0.0 }
 0x110   :  { %v180_v23 = vsel %vm141_vm2, %v178_v19, %v155_v10  ;;  %v194_v24 = vsel %vm141_vm2, %v172_v12, 0.0 }
 0x111   :  { %v183_v25 = vcombine.low %v179_v21, %v180_v23  ;;  %v197_v26 = vcombine.low %v193_v22, %v194_v24 }
 0x113   :  { %240 = vst.sshfl [vmem:[#allocation8] sm:$0x33 pattern:$0x76325410] %v183_v25 }
 0x114   :  { %241 = vst.sshfl [vmem:[#allocation9] sm:$0x33 pattern:$0x76325410] %v197_v26 }
 0x115   :  { %329 = shalt.err (!%p326_p0)
}
 0x116   :  { %s330_s15 = scalar_lea.hbm %s484_s5, 64 }
 0x117   :  { %p331_p1 = scmp.ne.s32.totalorder %s484_s5, %s330_s15  ;;  %p334_p2 = scmp.lt.u32.totalorder %s330_s15, %s484_s5 }
 0x119   :  { %p336_p3 = pnand %p334_p2, %p331_p1 }
 0x11b   :  { %339 = shalt.err (!%p336_p3)
}
 0x11c   :  { %216 = dma.vmem_to_hbm [thread:$0]  %s214_s3, 64, %s484_s5, [#allocation4]  }
 0x11d   :  { %s340_s21 = scalar_lea.vmem %s224_s11, 64  ;;  %p345_p5 = scmp.lt.s32.totalorder %s224_s11, %s224_s11 }
 0x11e   :  { %p341_p4 = scmp.ne.s32.totalorder %s224_s11, %s340_s21  ;;  %p346_p6 = scmp.lt.s32.totalorder %s340_s21, %s340_s21 }
 0x120   :  { %p347_p7 = por %p346_p6, %p345_p5 }
 0x122   :  { %p348_p8 = pnand %p347_p7, %p341_p4 }
 0x124   :  { %351 = shalt.err (!%p348_p8)
}
 0x125   :  { %s352_s25 = scalar_lea.hbm %s485_s6, 64 }
 0x126   :  { %p353_p9 = scmp.ne.s32.totalorder %s485_s6, %s352_s25  ;;  %p356_p10 = scmp.lt.u32.totalorder %s352_s25, %s485_s6 }
 0x128   :  { %p358_p11 = pnand %p356_p10, %p353_p9 }
 0x12a   :  { %361 = shalt.err (!%p358_p11)
}
 0x12b   :  { %226 = dma.vmem_to_hbm [thread:$0]  %s224_s11, 64, %s485_s6, [#allocation10]  }
 0x12c   :  { %366 = dma.done.wait [#allocation4], 64  }
 0x12d   :  { %367 = vsyncadd [#allocation4], 4294967232 }
 0x12e   :  { %368 = dma.done.wait [#allocation10], 64  }
 0x12f   :  { %369 = vsyncadd [#allocation10], 4294967232 }
 0x130   :  { %233 = vsyncpa [#allocation3], 1 }
 0x131   :  { %234 = vsyncpa [#allocation6], 1 }
 0x132   :  { %235 = vsyncpa [#allocation4], 1 }
 0x133   :  { %236 = vsyncpa [#allocation10], 1 }

</bundles_post_ra>
